<compile_context>
chip_gen: v7x
topology: tpu7x:2x2x1
jax: 0.10.0
libtpu: 0.0.40
codegen_flags: <defaults>
</compile_context>

<pallas_src>
import functools
import math

import jax
import jax.numpy as jnp
from jax.experimental import pallas as pl
from jax.experimental.pallas import tpu as pltpu


def _round_up(x, m):
    return ((x + m - 1) // m) * m


def _vmem_capacity_bytes():
    """Physical VMEM per TensorCore; conservative 64 MiB (v7x) fallback."""
    try:
        info = pltpu.get_tpu_info()
        cap = getattr(info, "vmem_capacity_bytes", None)
        if cap:
            return int(cap)
    except Exception:
        pass
    return 64 * 1024 * 1024


# ----------------------------- kernels ---------------------------------------


def _gcn_small_kernel(adj_ref, x_ref, w_ref, b_ref, o_ref, *, compute_dtype):
    """Whole-batch-element fused kernel (everything resident in VMEM).

    Keeps PyTorch's exact order: support = x @ W, out = relu(adj @ support + b).
    adj_ref (N,N), x_ref (N,Fin), w_ref (Fin,Fout), b_ref (1,Fout) f32,
    o_ref (N,Fout).
    """
    support = jnp.dot(x_ref[...].astype(compute_dtype),
                      w_ref[...].astype(compute_dtype),
                      preferred_element_type=jnp.float32)
    out = jnp.dot(adj_ref[...].astype(compute_dtype),
                  support.astype(compute_dtype),
                  preferred_element_type=jnp.float32)
    o_ref[...] = jnp.maximum(out + b_ref[...], 0.0).astype(o_ref.dtype)


def _gcn_adj_matmul_kernel(adj_ref, s_ref, b_ref, o_ref, acc_ref, *,
                           compute_dtype):
    """Row/contraction tiled out = relu(adj @ support + b).

    adj_ref: (tm, tk) in the caller's dtype (cast here -> no padded/cast HBM
    copy of adj), s_ref: (tk, Fout_p) already in compute_dtype,
    b_ref: (1, Fout_p) f32, o_ref: (tm, Fout_p), acc_ref: (tm, Fout_p) f32.
    """
    k = pl.program_id(2)

    @pl.when(k == 0)
    def _():
        acc_ref[...] = jnp.zeros_like(acc_ref)

    acc_ref[...] += jnp.dot(adj_ref[...].astype(compute_dtype), s_ref[...],
                            preferred_element_type=jnp.float32)

    @pl.when(k == pl.num_programs(2) - 1)
    def _():
        o_ref[...] = jnp.maximum(acc_ref[...] + b_ref[...], 0.0).astype(o_ref.dtype)


# ----------------------------- tiling ----------------------------------------


def _choose_tiles(N_p, Fout_p, adj_itemsize, cd_itemsize, out_itemsize, budget):
    """Largest (tm, tk) multiples of 128 dividing N_p whose double-buffered
    VMEM footprint fits the per-generation budget."""
    cands = [c for c in range(128, min(N_p, 4096) + 1, 128) if N_p % c == 0]
    cands.sort(reverse=True)

    def footprint(tm, tk):
        return (2 * tm * tk * adj_itemsize          # adj tile (double-buffered)
                + 2 * tk * Fout_p * cd_itemsize     # support tile
                + 2 * tm * Fout_p * out_itemsize    # output tile
                + tm * Fout_p * 4                   # f32 accumulator scratch
                + 2 * Fout_p * 4)                   # bias

    for tm in cands:
        for tk in cands:
            if footprint(tm, tk) <= budget:
                return tm, tk
    # TODO(synk): tile Fout as well for extremely wide layers (Fout_p >> 8K).
    return 128, 128


# ----------------------------- wrapper ----------------------------------------


def graph_convolution(adj, x, weight, bias, *, compute_dtype=jnp.bfloat16):
    """GCN forward: relu(adj @ (x @ W) + b).

    adj: (B, N, N), x: (B, N, Fin), weight: (Fin, Fout), bias: (Fout,).
    compute_dtype: MXU operand dtype (bf16 default; accumulation is f32).
    """
    B, N, Fin = x.shape
    Fout = weight.shape[1]
    out_dtype = x.dtype

    vmem_phys = _vmem_capacity_bytes()
    # ~96 MiB on v5e/v6e (128 MiB physical), ~48 MiB on v7x (64 MiB physical).
    vmem_limit = min((vmem_phys * 3) // 4, 100 * 1024 * 1024)
    budget = vmem_limit - (4 * 1024 * 1024)  # headroom for Mosaic internals

    bias2d = bias.astype(jnp.float32).reshape(1, Fout)

    # ---- Small-graph path: one batch element fits comfortably in VMEM. ------
    small_bytes = 4 * (3 * N * N + 3 * N * Fin + 3 * N * Fout + Fin * Fout + Fout)
    if small_bytes <= min(budget, 4 * 1024 * 1024):
        kernel = functools.partial(_gcn_small_kernel, compute_dtype=compute_dtype)
        return pl.pallas_call(
            kernel,
            out_shape=jax.ShapeDtypeStruct((B, N, Fout), out_dtype),
            grid_spec=pltpu.PrefetchScalarGridSpec(
                num_scalar_prefetch=0,
                grid=(B,),
                in_specs=[
                    pl.BlockSpec((pl.Squeezed(), N, N), lambda b: (b, 0, 0)),
                    pl.BlockSpec((pl.Squeezed(), N, Fin), lambda b: (b, 0, 0)),
                    pl.BlockSpec((Fin, Fout), lambda b: (0, 0)),
                    pl.BlockSpec((1, Fout), lambda b: (0, 0)),
                ],
                out_specs=pl.BlockSpec((pl.Squeezed(), N, Fout),
                                       lambda b: (b, 0, 0)),
            ),
            compiler_params=pltpu.CompilerParams(
                dimension_semantics=("parallel",),
                vmem_limit_bytes=vmem_limit,
            ),
        )(adj, x, weight, bias2d)

    # ---- Large-graph path. ---------------------------------------------------
    # support = x @ W with plain XLA (f32 accumulation): O(B*N*Fout) bytes,
    # negligible vs the O(B*N^2) adj stream.  Precomputing it outside the
    # kernel removes the per-batch VMEM support cache, keeps both Pallas grid
    # axes megacore-parallel, and preserves PyTorch's op order exactly.
    support = jnp.einsum(
        "bnf,fo->bno",
        x.astype(compute_dtype), weight.astype(compute_dtype),
        preferred_element_type=jnp.float32,
        precision=jax.lax.Precision.HIGHEST,
    ).astype(compute_dtype)

    # Pad only the small operands (support feature dim / bias) to lane width.
    Fout_p = _round_up(Fout, 128)
    if Fout_p != Fout:
        support = jnp.pad(support, ((0, 0), (0, 0), (0, Fout_p - Fout)))
        bias2d = jnp.pad(bias2d, ((0, 0), (0, Fout_p - Fout)))

    # adj is streamed as-is (no padded / cast HBM copy) when N is 128-aligned;
    # the compute_dtype cast happens on the (tm, tk) tile inside the kernel.
    N_p = _round_up(N, 128)
    if N_p != N:
        # TODO(synk): avoid this O(B*N^2) copy for large unaligned N by masking
        # ragged edge tiles inside the kernel instead of zero-padding adj.
        adj_in = jnp.pad(adj, ((0, 0), (0, N_p - N), (0, N_p - N)))
        support = jnp.pad(support, ((0, 0), (0, N_p - N), (0, 0)))
    else:
        adj_in = adj

    tm, tk = _choose_tiles(N_p, Fout_p,
                           adj_in.dtype.itemsize,
                           jnp.dtype(compute_dtype).itemsize,
                           jnp.dtype(out_dtype).itemsize,
                           budget)

    kernel = functools.partial(_gcn_adj_matmul_kernel, compute_dtype=compute_dtype)
    out = pl.pallas_call(
        kernel,
        out_shape=jax.ShapeDtypeStruct((B, N_p, Fout_p), out_dtype),
        grid_spec=pltpu.PrefetchScalarGridSpec(
            num_scalar_prefetch=0,
            grid=(B, N_p // tm, N_p // tk),
            in_specs=[
                pl.BlockSpec((pl.Squeezed(), tm, tk), lambda b, r, k: (b, r, k)),
                pl.BlockSpec((pl.Squeezed(), tk, Fout_p), lambda b, r, k: (b, k, 0)),
                pl.BlockSpec((1, Fout_p), lambda b, r, k: (0, 0)),
            ],
            out_specs=pl.BlockSpec((pl.Squeezed(), tm, Fout_p),
                                   lambda b, r, k: (b, r, 0)),
            scratch_shapes=[pltpu.VMEM((tm, Fout_p), jnp.float32)],
        ),
        compiler_params=pltpu.CompilerParams(
            dimension_semantics=("parallel", "parallel", "arbitrary"),
            vmem_limit_bytes=vmem_limit,
        ),
    )(adj_in, support, bias2d)

    if N_p != N or Fout_p != Fout:
        out = out[:, :N, :Fout]
    return out


def reference(adj, x, weight, bias):
    support = jnp.einsum("bnf,fo->bno", x, weight,
                         precision=jax.lax.Precision.HIGHEST)
    out = jnp.einsum("bmn,bno->bmo", adj, support,
                     precision=jax.lax.Precision.HIGHEST)
    return jnp.maximum(out + bias[None, None, :], 0.0)


if __name__ == "__main__":
    key = jax.random.PRNGKey(0)
    k_adj, k_x, k_w, k_b = jax.random.split(key, 4)

    # --- Small shapes consistent with the module (small-graph path, no padding).
    B, N, Fin, Fout = 2, 16, 8, 32
    stdv = 1.0 / math.sqrt(Fout)  # reset_parameters(): U(-stdv, stdv), stdv=1/sqrt(out)
    weight = jax.random.uniform(k_w, (Fin, Fout), jnp.float32, -stdv, stdv)
    bias = jax.random.uniform(k_b, (Fout,), jnp.float32, -stdv, stdv)
    x = jax.random.normal(k_x, (B, N, Fin), jnp.float32)
    adj = jax.random.uniform(k_adj, (B, N, N), jnp.float32)
    ref = reference(adj, x, weight, bias)

    # 1) f32 MXU operands -> tight tolerance.
    out = jax.block_until_ready(
        graph_convolution(adj, x, weight, bias, compute_dtype=jnp.float32))
    assert out.shape == (B, N, Fout)
    assert jnp.allclose(out, ref, atol=1e-4, rtol=1e-4)

    # 2) Default bf16 MXU operands with f32 accumulation -> relaxed tolerance.
    out_bf16 = jax.block_until_ready(graph_convolution(adj, x, weight, bias))
    assert out_bf16.shape == (B, N, Fout)
    assert jnp.allclose(out_bf16, ref, atol=1e-1, rtol=1e-1)

    # 3) 128-aligned graph exercising the tiled large path (row + contraction
    #    grid axes, adj streamed without a padded copy, Fout padded 96 -> 128).
    B2, N2, Fin2, Fout2 = 2, 1024, 64, 96
    stdv2 = 1.0 / math.sqrt(Fout2)
    weight2 = jax.random.uniform(k_w, (Fin2, Fout2), jnp.float32, -stdv2, stdv2)
    bias2 = jax.random.uniform(k_b, (Fout2,), jnp.float32, -stdv2, stdv2)
    x2 = jax.random.normal(k_x, (B2, N2, Fin2), jnp.float32)
    adj2 = jax.random.uniform(k_adj, (B2, N2, N2), jnp.float32)
    ref2 = reference(adj2, x2, weight2, bias2)
    out2 = jax.block_until_ready(
        graph_convolution(adj2, x2, weight2, bias2, compute_dtype=jnp.float32))
    assert out2.shape == (B2, N2, Fout2)
    assert jnp.allclose(out2, ref2, atol=2e-3, rtol=2e-3)

    print("KERNEL_OK")
</pallas_src>

<mosaic_0001>
module attributes {stable_mosaic.version = 11 : i64} {
  func.func @_gcn_small_kernel(%arg0: i32, %arg1: memref<1x16x16xf32, #tpu.memory_space<vmem>>, %arg2: memref<1x16x8xf32, #tpu.memory_space<vmem>>, %arg3: memref<8x32xf32, #tpu.memory_space<vmem>>, %arg4: memref<1x32xf32, #tpu.memory_space<vmem>>, %arg5: memref<1x16x32xf32, #tpu.memory_space<vmem>>) attributes {dimension_semantics = [#tpu.dimension_semantics<parallel>], iteration_bounds = array<i64: 2>, scalar_prefetch = 0 : i64, scratch_operands = 0 : i64, tpu.core_type = #tpu.core_type<tc>, window_params = [{transform_indices = @transform_0, window_bounds = array<i64: 1, 16, 16>}, {transform_indices = @transform_1, window_bounds = array<i64: 1, 16, 8>}, {pipeline_mode = #tpu.pipeline_mode<synchronous>, transform_indices = @transform_2, window_bounds = array<i64: 8, 32>}, {pipeline_mode = #tpu.pipeline_mode<synchronous>, transform_indices = @transform_3, window_bounds = array<i64: 1, 32>}, {transform_indices = @transform_4, window_bounds = array<i64: 1, 16, 32>}]} {
    %c0 = arith.constant 0 : index
    %c0_0 = arith.constant 0 : index
    %c0_1 = arith.constant 0 : index
    %0 = vector.load %arg2[%c0, %c0_0, %c0_1] : memref<1x16x8xf32, #tpu.memory_space<vmem>>, vector<1x16x8xf32>
    %1 = vector.shape_cast %0 : vector<1x16x8xf32> to vector<16x8xf32>
    %c0_2 = arith.constant 0 : index
    %c0_3 = arith.constant 0 : index
    %2 = vector.load %arg3[%c0_2, %c0_3] : memref<8x32xf32, #tpu.memory_space<vmem>>, vector<8x32xf32>
    %cst = arith.constant dense<0.000000e+00> : vector<16x32xf32>
    %3 = tpu.matmul %1, %2, %cst {dimension_numbers = #tpu.dot_dimension_numbers<[1], [0], [0], [1], [0, 0, 1, 1], [], []>} : vector<16x8xf32>, vector<8x32xf32>, vector<16x32xf32> -> vector<16x32xf32>
    %c0_4 = arith.constant 0 : index
    %c0_5 = arith.constant 0 : index
    %c0_6 = arith.constant 0 : index
    %4 = vector.load %arg1[%c0_4, %c0_5, %c0_6] : memref<1x16x16xf32, #tpu.memory_space<vmem>>, vector<1x16x16xf32>
    %5 = vector.shape_cast %4 : vector<1x16x16xf32> to vector<16x16xf32>
    %cst_7 = arith.constant dense<0.000000e+00> : vector<16x32xf32>
    %6 = tpu.matmul %5, %3, %cst_7 {dimension_numbers = #tpu.dot_dimension_numbers<[1], [0], [0], [1], [0, 0, 1, 1], [], []>} : vector<16x16xf32>, vector<16x32xf32>, vector<16x32xf32> -> vector<16x32xf32>
    %c0_8 = arith.constant 0 : index
    %c0_9 = arith.constant 0 : index
    %7 = vector.load %arg4[%c0_8, %c0_9] : memref<1x32xf32, #tpu.memory_space<vmem>>, vector<1x32xf32>
    %8 = vector.broadcast %7 : vector<1x32xf32> to vector<16x32xf32>
    %9 = arith.addf %6, %8 : vector<16x32xf32>
    %cst_10 = arith.constant 0.000000e+00 : f32
    %10 = vector.broadcast %cst_10 : f32 to vector<16x32xf32>
    %11 = arith.maximumf %9, %10 : vector<16x32xf32>
    %c0_11 = arith.constant 0 : index
    %c0_12 = arith.constant 0 : index
    %c0_13 = arith.constant 0 : index
    %12 = vector.load %arg5[%c0_11, %c0_12, %c0_13] : memref<1x16x32xf32, #tpu.memory_space<vmem>>, vector<1x16x32xf32>
    %13 = vector.shape_cast %12 : vector<1x16x32xf32> to vector<16x32xf32>
    %14 = vector.shape_cast %11 : vector<16x32xf32> to vector<1x16x32xf32>
    tpu.vector_store %arg5[%c0_11, %c0_12, %c0_13], %14 {strides = array<i32>} : memref<1x16x32xf32, #tpu.memory_space<vmem>>, vector<1x16x32xf32>,
    return
  }
  func.func @transform_0(%arg0: i32) -> (i32, i32, i32) {
    %c0_i32 = arith.constant 0 : i32
    %c0_i32_0 = arith.constant 0 : i32
    %c0_i32_1 = arith.constant 0 : i32
    return %arg0, %c0_i32, %c0_i32_0 : i32, i32, i32
  }
  func.func @transform_1(%arg0: i32) -> (i32, i32, i32) {
    %c0_i32 = arith.constant 0 : i32
    %c0_i32_0 = arith.constant 0 : i32
    %c0_i32_1 = arith.constant 0 : i32
    return %arg0, %c0_i32, %c0_i32_0 : i32, i32, i32
  }
  func.func @transform_2(%arg0: i32) -> (i32, i32) {
    %c0_i32 = arith.constant 0 : i32
    %c0_i32_0 = arith.constant 0 : i32
    %c0_i32_1 = arith.constant 0 : i32
    return %c0_i32, %c0_i32_0 : i32, i32
  }
  func.func @transform_3(%arg0: i32) -> (i32, i32) {
    %c0_i32 = arith.constant 0 : i32
    %c0_i32_0 = arith.constant 0 : i32
    %c0_i32_1 = arith.constant 0 : i32
    return %c0_i32, %c0_i32_0 : i32, i32
  }
  func.func @transform_4(%arg0: i32) -> (i32, i32, i32) {
    %c0_i32 = arith.constant 0 : i32
    %c0_i32_0 = arith.constant 0 : i32
    %c0_i32_1 = arith.constant 0 : i32
    return %arg0, %c0_i32, %c0_i32_0 : i32, i32, i32
  }
}

</mosaic_0001>

<bundles_post_ra>
// kernel: tpu_custom_call.1
= control target key start
LH: loop header
LB: loop body
LE: loop exit
PB: predicated region body
PF: predicated region fallthrough
CT: control target
= control target key end

     0   :  { %9 = vsyncpa [#allocation3], 0  ;;  %s775_s0 = inlined_call_operand.vmem [shape: f32[2,16,16], index: 0, kind: input, shape index: {}]   ;;  %s776_s1 = inlined_call_operand.vmem [shape: f32[2,16,8], index: 1, kind: input, shape index: {}]   ;;  %s777_s2 = inlined_call_operand.vmem [shape: f32[8,32], index: 2, kind: input, shape index: {}]   ;;  %s778_s3 = inlined_call_operand.vmem [shape: f32[1,32], index: 3, kind: input, shape index: {}]   ;;  %s779_s4 = inlined_call_operand.hbm [shape: f32[2,16,32], index: 4, kind: output, shape index: {}]  }
   0x1   :  { %11 = vsyncpa [#allocation3 + $0x1], 0  ;;  %s663_s15 = smov 0   ;;  %s665_s16 = smov 0  }
   0x2   :  { %s667_s17 = smov 0   ;;  %s669_s18 = smov 0  }
   0x3 LB: > { %s684_s19 = sadd.s32 4294967295, %s633_s18   ;;  %s485_s20 = sadd.s32 4294967294, %s633_s18   ;;  %s633_s18 = sphi %s669_s18, %s785_s18   ;;  %s629_s17 = sphi %s667_s17, %s784_s17   ;;  %s625_s16 = sphi %s665_s16, %s783_s16   ;;  %s621_s15 = sphi %s663_s15, %s782_s15  }
   0x4   : > { %s688_s21 = sadd.s32 1, %s633_s18   ;;  %s118_s22 = sadd.s32 1, %s629_s17 }
   0x5   : > { %s115_s23 = ssub.s32 %s633_s18, %s688_s21  ;;  %p128_p0 = scmp.ne.s32.totalorder %s629_s17, %s625_s16 }
   0x6   : > { %p116_p1 = scmp.eq.s32.totalorder %s115_s23, 0  ;;  %p129_p2 = scmp.eq.s32.totalorder %s684_s19, 1 }
   0x7   : > { %p134_p3 = scmp.ne.s32.totalorder %s625_s16, %s621_s15  ;;  %p135_p4 = scmp.eq.s32.totalorder %s485_s20, 1 }
   0x8   : > { %s699_s24 = scalar_select %p116_p1, %s629_s17, %s118_s22  }
   0x9   : > { %p701_p5 = por %p129_p2, %p128_p0  ;;  %p705_p6 = por %p135_p4, %p134_p3 }
   0xa   : > { %p488_p7 = scmp.ge.s32.totalorder %s633_s18, 1  ;;  %p175_p8 = scmp.lt.s32.totalorder %s633_s18, 3 }
   0xc   : > { %p176_p9 = pnand %p488_p7, %p175_p8 }
   0xd   : > { %v218_v0 = vld [vmem:[%s777_s2] sm:$0xff] (!%p176_p9)  ;;  %p206_p10 = scmp.lt.s32.totalorder (!%p176_p9), %s684_s19, 1  ;;  %vm219_vm0 = vcmask (!%p176_p9), 64512   ;;  %vm310_vm1 = vcmask (!%p176_p9), 130048   ;;  %s203_s11 = sand.u32 (!%p176_p9), 1, %s625_s16   ;;  %vm394_vm2 = vcmask (!%p176_p9), 261120  }
   0xe   : > { %179 = sbr.rel (%p176_p9) target bundleno = 478 (0x1de), region = 36  ;;  %514 = vmatprep.subr.mxu0 (!%p176_p9), %v218_v0  ;;  %s489_s12 = sshll.u32 (!%p176_p9), %s203_s11, 4  ;;  %v496_v8 = vld [vmem:[%s778_s3] ss:$0 sm:$0xff] (!%p176_p9) }
   0xf   : > { %515 = vmatpush3.msra.mxu0 (!%p176_p9), %v218_v0  ;;  %s205_s20 = scalar_lea.vmem (!%p176_p9), [#allocation2], %s489_s12  ;;  %s506_s23 = sshll.u32 (!%p176_p9), %s684_s19, 8 }
  0x10   : > { %s411_s22 = sshll.u32 (!%p176_p9), %s205_s20, 4  ;;  %s635_s5 = smov (!%p176_p9), [#allocation2]   ;;  %s727_s22 = int_to_ptr.vmem [resolvable:$true] %s411_s22 }
  0x11   : > { %s575_s6 = sshll.u32 (!%p176_p9), %s635_s5, 4  ;;  %s576_s6 = int_to_ptr.vmem [resolvable:$false] %s575_s6 }
  0x12   : > { %p578_p0 = scmp.lt.s32.totalorder (!%p176_p9), %s727_s22, %s576_s6 }
  0x15   : > { %s207_s29 = scalar_select %p206_p10, %s684_s19, 1 }
  0x16   : > { %s571_s19 = scalar_lea.vmem %s727_s22, 256 }
  0x17   : > { %s504_s30 = sshll.u32 %s207_s29, 4  ;;  %s732_s29 = scalar_lea.hbm %s779_s4, %s506_s23 }
  0x18   : > { %s215_s7 = scalar_lea.vmem %s776_s1, %s504_s30  ;;  %s210_s10 = scalar_lea.vmem %s775_s0, %s504_s30 }
  0x19   : > { %v216_v1 = vld [vmem:[%s215_s7] sm:$0xff]  ;;  %v217_v2 = vld [vmem:[%s215_s7 + $0x8] sm:$0xff]  ;;  %s734_s30 = scalar_lea.sflag [#allocation3], %s203_s11  ;;  %p572_p11 = scmp.ne.s32.totalorder %s727_s22, %s571_s19 }
  0x1a   : > { %516 = vmatprep.mubr.msk.f32.mxu0 %vm219_vm0, %v216_v1  ;;  %v301_v3 = vld [vmem:[%s210_s10] sm:$0xff]  ;;  %v302_v7 = vld [vmem:[%s210_s10 + $0x8] sm:$0xff]  ;;  %s577_s7 = scalar_lea.vmem %s576_s6, 512 }
  0x1b   : > { %517 = vmatmul.mubr.msk.f32.vlgmr.msra.gmra.mrb[0].mxu0 %vm219_vm0, %v217_v2  ;;  %523 = vmatprep.mubr.msk.f32.mxu1 %vm310_vm1, %v301_v3  ;;  %p573_p12 = pnand %p572_p11, %p701_p5  ;;  %p579_p1 = scmp.lt.s32.totalorder %s577_s7, %s571_s19 }
  0x1d   : > { %p574_p13 = pneg %p573_p12  ;;  %p580_p2 = por %p579_p1, %p578_p0 }
  0x1f   : > { %p581_p3 = pnand %p580_p2, %p574_p13 }
  0xee   : > { %v518_v4 = vpop.f32.mrb[0].mxu0 }
  0xef   : > { %v292_v5 = vpop.f32.mrb[1].mxu0 }
  0xf0   : > { %v526_v6 = vpack.c.bf16 %v518_v4, %v292_v5 }
  0xf2   : > { %527 = vmatprep.subr.bf16.mxu1 %v526_v6 }
  0xf3   : > { %529 = vmatpush3.bf16.msra.mxu1 %v526_v6 }
  0xf6   : > { %524 = vmatmul.mubr.msk.f32.vlgmr.msra.gmra.mrb[0].mxu1 %vm310_vm1, %v302_v7 }
 0x1c9   : > { %v525_v9 = vpop.f32.mrb[0].mxu1 }
 0x1ca   : > { %v389_v10 = vadd.f32 %v525_v9, %v496_v8  ;;  %v383_v11 = vpop.f32.mrb[1].mxu1 }
 0x1cb   : > { %v384_v12 = vadd.f32 %v496_v8, %v383_v11 }
 0x1cc   : > { %v393_v13 = vmax.f32 %v389_v10, 0.0 }
 0x1cd   : > { %v392_v14 = vmax.f32 %v384_v12, 0.0 }
 0x1ce   : > { %396 = vst.msk [vmem:[%s205_s20 + $0x8] sm:$0xff] %vm394_vm2, %v393_v13 }
 0x1cf   : > { %395 = vst.msk [vmem:[%s205_s20] sm:$0xff] %vm394_vm2, %v392_v14 }
 0x1d0   : > { %584 = shalt.err (!%p581_p3)
}
 0x1d1   : > { %s585_s8 = scalar_lea.hbm %s732_s29, 256  ;;  %s589_s11 = scalar_lea.hbm %s779_s4, 512 }
 0x1d2   : > { %p586_p4 = scmp.ne.s32.totalorder %s732_s29, %s585_s8  ;;  %p590_p9 = scmp.lt.u32.totalorder %s732_s29, %s779_s4 }
 0x1d3   : > { %p591_p10 = scmp.lt.u32.totalorder %s589_s11, %s585_s8  ;;  %p593_p12 = scmp.lt.u32.totalorder %s585_s8, %s732_s29 }
 0x1d4   : > { %p587_p7 = pnand %p586_p4, %p701_p5 }
 0x1d5   : > { %p592_p11 = por %p591_p10, %p590_p9 }
 0x1d6   : > { %p588_p8 = pneg %p587_p7 }
 0x1d7   : > { %p594_p13 = por %p593_p12, %p592_p11 }
 0x1d9   : > { %p595_p0 = pnand %p594_p13, %p588_p8 }
 0x1db   : > { %598 = shalt.err (!%p595_p0)
}
 0x1dc   : > { %s636_s14 = smov 128   ;;  %s637_s20 = smov 8  }
 0x1dd   : > { %530 = dma.vmem_to_hbm [thread:$0]  (%p701_p5), %s727_s22, 256, %s732_s29, %s734_s30, %s636_s14, %s636_s14, %s637_s20  }
 0x1de PF: > { %p536_p1 = scmp.ge.s32.totalorder %s633_s18, 2  ;;  %s426_s23 = sand.u32 1, %s621_s15  }
 0x1df   : > { %s427_s27 = scalar_lea.sflag [#allocation3], %s426_s23 }
 0x1e0   : > { %p533_p2 = pnand %p536_p1, %p705_p6 }
 0x1e2   : > { %616 = dma.done.wait (!%p533_p2), %s427_s27, 256  }
 0x1e3   : > { %618 = vsyncadd (!%p533_p2), %s427_s27, 4294967040  ;;  %p14_p3 = scmp.ge.s32.totalorder %s688_s21, 4   ;;  %s782_s15 = smov %s625_s16 }
 0x1e4   : > { %s783_s16 = smov %s629_s17  ;;  %s784_s17 = smov %s699_s24 }
 0x1e5   : > { %s785_s18 = smov %s688_s21  ;;  %16 = sbr.rel (!%p14_p3) target bundleno = 3 (0x3), region = 74 }
 0x1ec   :  { %432 = vsyncpa [#allocation3], 1 }
 0x1ed   :  { %434 = vsyncpa [#allocation3 + $0x1], 1 }

</bundles_post_ra>
